<compile_context>
chip_gen: v7x
topology: tpu7x:2x2x1
jax: 0.10.0
libtpu: 0.0.40
codegen_flags: <defaults>
</compile_context>

<pallas_src>
import functools

import jax
import jax.numpy as jnp
from jax.experimental import pallas as pl
from jax.experimental.pallas import tpu as pltpu

_LANES = 128
_SUBLANES = 8
_MAX_ROWS_PER_TILE = 8192          # review: byte budget binds; allow up to 8192 rows
_TGT_BYTES_PER_ROW = 512           # (TM,1) i32 block pads to (TM,128) lanes in VMEM


@functools.lru_cache(maxsize=None)
def _tpu_plan():
    """Per-generation (budget bytes per buffer, vmem limit, grid dim semantics)."""
    try:
        kind = jax.devices()[0].device_kind.lower()
    except Exception:  # pragma: no cover - defensive; default backend always exists
        kind = ""
    if "v7" in kind:
        # v7x: 64 MiB physical VMEM/TC -> keep the full plan well under ~48 MiB
        # (~10 MiB per double-buffered input set); shard row tiles across both TCs.
        budget = 10 * 1024 * 1024
        vmem_limit = 48 * 1024 * 1024
        core_par = getattr(pltpu, "CORE_PARALLEL", None)
        arb = getattr(pltpu, "ARBITRARY", "arbitrary")
        dim_sem = (core_par, arb) if core_par is not None else ("parallel", "arbitrary")
    else:
        # v5e / v6e: 128 MiB physical VMEM, purely HBM-bound -> bigger tiles.
        budget = 14 * 1024 * 1024
        vmem_limit = 64 * 1024 * 1024
        dim_sem = ("parallel", "arbitrary")
    return budget, vmem_limit, dim_sem


def _pick_tiles(n, c, itemsize, budget, row_block, class_block):
    """Choose (TM rows, TC classes) per tile; `budget` is bytes per input buffer."""
    # Class tile: full C unless even an 8-row tile would overflow the budget.
    if class_block is not None:
        tc = c if class_block >= c else max(_LANES, (class_block // _LANES) * _LANES)
    elif _SUBLANES * (c * itemsize + _TGT_BYTES_PER_ROW) <= budget:
        tc = c
    else:
        tc = max(_LANES, (budget // (_SUBLANES * itemsize)) // _LANES * _LANES)
    # Row tile: largest sublane-aligned count fitting the budget, including the
    # lane-padded target block (512 B/row).
    row_bytes = tc * itemsize + _TGT_BYTES_PER_ROW
    tm = min(budget // row_bytes, _MAX_ROWS_PER_TILE)
    if row_block is not None:
        tm = min(tm, row_block)
    tm = n if tm >= n else max(_SUBLANES, (tm // _SUBLANES) * _SUBLANES)
    return int(tm), int(tc)


def _logp_spec(tm, tc, deep_pipeline):
    index_map = lambda i, k: (i, k)
    if deep_pipeline:
        try:  # 3-deep pipeline hides exposed DMA issue latency on sub-MiB tiles.
            return pl.BlockSpec((tm, tc), index_map, pipeline_mode=pl.Buffered(3))
        except (AttributeError, TypeError):
            pass
    return pl.BlockSpec((tm, tc), index_map)


def _nll_partial_kernel(logp_ref, tgt_ref, out_ref, *, class_block, accumulate):
    """Partial sum of target log-probs for one (TM, TC) tile.

    logp_ref : (TM, TC) log-probabilities, wire dtype (f32 or bf16), VMEM
    tgt_ref  : (TM, 1) int32 targets (rows past N are padded with -1), VMEM
    out_ref  : (1, 128) f32 lane-dense partial sum for this row tile
    """
    k = pl.program_id(1)
    logp = logp_ref[...]                                   # stay in wire dtype
    tm, tc = logp.shape

    # Shift targets into this class tile's local lane coordinates.  Padded rows
    # (target == -1) and targets belonging to other class tiles fall outside
    # [0, tc), so they never match the lane iota -- no separate tail mask needed.
    local_tgt = tgt_ref[...] - k * class_block             # (TM, 1) int32
    lane_ids = jax.lax.broadcasted_iota(jnp.int32, (tm, tc), 1)
    picked = jnp.where(lane_ids == local_tgt, logp, jnp.zeros((), logp.dtype))

    # Lane (class-axis) reduce in the wire dtype is exact: <= 1 nonzero per row.
    row_sums = jnp.sum(picked, axis=-1, keepdims=True).astype(jnp.float32)
    partial = jnp.sum(row_sums)                            # f32 scalar

    if accumulate:                                         # class axis is grid-tiled
        @pl.when(k == 0)
        def _():
            out_ref[...] = jnp.zeros_like(out_ref)
        out_ref[...] += partial
    else:
        # Lane-dense, unmasked (1, 128) store.
        out_ref[...] = jnp.full(out_ref.shape, partial, dtype=jnp.float32)


@functools.partial(jax.jit, static_argnames=("row_block", "class_block"))
def nll_loss(net_out, class_id, *, row_block=None, class_block=None):
    """net_out: (N, C) log-probs (f32/bf16); class_id: (N,) or (N, 1) int targets.

    `row_block` / `class_block` are optional static tiling overrides (tuning/tests).
    """
    n, c = net_out.shape
    itemsize = jnp.dtype(net_out.dtype).itemsize
    budget, vmem_limit, dim_sem = _tpu_plan()
    tm, tc = _pick_tiles(n, c, itemsize, budget, row_block, class_block)

    num_row_tiles = pl.cdiv(n, tm)
    num_c_tiles = pl.cdiv(c, tc)
    n_pad = num_row_tiles * tm

    # Targets: flatten (handles (N,) or (N,1)), pad rows past N with -1
    # (matches no class id -> those rows contribute exactly 0 to the sum).
    tgt = class_id.reshape(-1).astype(jnp.int32)
    tgt = jnp.pad(tgt, (0, n_pad - n), constant_values=-1).reshape(n_pad, 1)

    tile_bytes = tm * tc * itemsize
    deep_pipeline = tile_bytes <= (1 << 20) and num_row_tiles * num_c_tiles >= 3

    kernel = functools.partial(_nll_partial_kernel, class_block=tc,
                               accumulate=num_c_tiles > 1)

    partials = pl.pallas_call(
        kernel,
        out_shape=jax.ShapeDtypeStruct((num_row_tiles, _LANES), jnp.float32),
        grid=(num_row_tiles, num_c_tiles),
        in_specs=[
            _logp_spec(tm, tc, deep_pipeline),             # log-probs, wire dtype
            pl.BlockSpec((tm, 1), lambda i, k: (i, 0)),    # padded int32 targets
        ],
        out_specs=pl.BlockSpec((1, _LANES), lambda i, k: (i, 0)),
        compiler_params=pltpu.CompilerParams(
            dimension_semantics=dim_sem,
            vmem_limit_bytes=vmem_limit,
        ),
        cost_estimate=pl.CostEstimate(
            flops=2 * n * c,
            transcendentals=0,
            bytes_accessed=(n * c * itemsize + num_c_tiles * n_pad * 4
                            + num_row_tiles * _LANES * 4),
        ),
    )(net_out, tgt)

    # Tiny cross-tile reduction + mean + negate; divide by the GLOBAL batch size N.
    total = jnp.sum(partials[:, 0])
    return -(total / jnp.float32(n))


def forward(net_out, batch):
    # Mirrors NLLLoss.forward: returns a dict with key 'loss'.
    return {"loss": nll_loss(net_out, batch["class_id"])}


if __name__ == "__main__":
    key = jax.random.PRNGKey(0)
    k1, k2, k3, k4, k5, k6 = jax.random.split(key, 6)

    # --- 1. Tiny demo shape implied by the module: batch of 8 samples, 16 classes.
    N, C = 8, 16
    logits = jax.random.normal(k1, (N, C), dtype=jnp.float32)
    net_out = jax.nn.log_softmax(logits, axis=-1)              # log-probabilities
    class_id = jax.random.randint(k2, (N, 1), 0, C, dtype=jnp.int32)

    out = forward(net_out, {"class_id": class_id})
    loss = jax.block_until_ready(out["loss"])
    ref = -jnp.mean(net_out[jnp.arange(N), class_id[:, 0]])
    assert jnp.allclose(loss, ref, atol=1e-6), (loss, ref)

    # bf16 wire format: streamed as bf16, upcast after the in-kernel class reduce.
    loss_bf16 = jax.block_until_ready(nll_loss(net_out.astype(jnp.bfloat16), class_id))
    assert jnp.allclose(loss_bf16, ref, atol=5e-2), (loss_bf16, ref)

    # --- 2. Multi-row-tile path with a ragged tail (N not a multiple of the tile),
    #         forced small row tile so the 3-deep pipeline branch is exercised too.
    N2, C2 = 2000, 16
    logits2 = jax.random.normal(k3, (N2, C2), dtype=jnp.float32)
    net_out2 = jax.nn.log_softmax(logits2, axis=-1)
    cid2 = jax.random.randint(k4, (N2, 1), 0, C2, dtype=jnp.int32)
    loss2 = jax.block_until_ready(nll_loss(net_out2, cid2, row_block=512))
    ref2 = -jnp.mean(net_out2[jnp.arange(N2), cid2[:, 0]])
    assert jnp.allclose(loss2, ref2, atol=1e-5, rtol=1e-5), (loss2, ref2)

    # --- 3. Class-tiled (accumulator) path, forced via class_block; C deliberately
    #         not a multiple of the class block to exercise the C-axis tail.
    N3, C3 = 64, 400
    logits3 = jax.random.normal(k5, (N3, C3), dtype=jnp.float32)
    net_out3 = jax.nn.log_softmax(logits3, axis=-1)
    cid3 = jax.random.randint(k6, (N3, 1), 0, C3, dtype=jnp.int32)
    loss3 = jax.block_until_ready(nll_loss(net_out3, cid3, class_block=128))
    ref3 = -jnp.mean(net_out3[jnp.arange(N3), cid3[:, 0]])
    assert jnp.allclose(loss3, ref3, atol=1e-6, rtol=1e-6), (loss3, ref3)

    print("KERNEL_OK")
</pallas_src>

<mosaic_0001>
module attributes {stable_mosaic.version = 11 : i64} {
  func.func @_nll_partial_kernel(%arg0: i32, %arg1: i32, %arg2: memref<8x16xf32, #tpu.memory_space<vmem>>, %arg3: memref<8x1xi32, #tpu.memory_space<vmem>>, %arg4: memref<1x128xf32, #tpu.memory_space<vmem>>) attributes {dimension_semantics = [#tpu.dimension_semantics<parallel>, #tpu.dimension_semantics<arbitrary>], iteration_bounds = array<i64: 1, 1>, scalar_prefetch = 0 : i64, scratch_operands = 0 : i64, tpu.core_type = #tpu.core_type<tc>, window_params = [{transform_indices = @transform_0, window_bounds = array<i64: 8, 16>}, {transform_indices = @transform_1, window_bounds = array<i64: 8, 1>}, {transform_indices = @transform_2, window_bounds = array<i64: 1, 128>}]} {
    %c0 = arith.constant 0 : index
    %c0_0 = arith.constant 0 : index
    %0 = vector.load %arg2[%c0, %c0_0] : memref<8x16xf32, #tpu.memory_space<vmem>>, vector<8x16xf32>
    %c0_1 = arith.constant 0 : index
    %c0_2 = arith.constant 0 : index
    %1 = vector.load %arg3[%c0_1, %c0_2] : memref<8x1xi32, #tpu.memory_space<vmem>>, vector<8x1xi32>
    %c16_i32 = arith.constant 16 : i32
    %2 = arith.muli %arg1, %c16_i32 : i32
    %3 = vector.broadcast %2 : i32 to vector<8x1xi32>
    %4 = arith.subi %1, %3 : vector<8x1xi32>
    %5 = tpu.iota {dimensions = array<i32: 1>} : vector<8x16xi32>
    %6 = vector.broadcast %4 : vector<8x1xi32> to vector<8x16xi32>
    %7 = arith.cmpi eq, %5, %6 : vector<8x16xi32>
    %cst = arith.constant 0.000000e+00 : f32
    %8 = vector.broadcast %cst : f32 to vector<8x16xf32>
    %9 = arith.select %7, %0, %8 : vector<8x16xi1>, vector<8x16xf32>
    %cst_3 = arith.constant dense<0.000000e+00> : vector<8xf32>
    %10 = vector.multi_reduction <add>, %9, %cst_3 [1] : vector<8x16xf32> to vector<8xf32>
    %11 = vector.shape_cast %10 : vector<8xf32> to vector<8x1xf32>
    %12 = vector.shape_cast %11 : vector<8x1xf32> to vector<1x8x1xf32>
    %cst_4 = arith.constant dense<0.000000e+00> : vector<1xf32>
    %13 = vector.multi_reduction <add>, %12, %cst_4 [1, 2] : vector<1x8x1xf32> to vector<1xf32>
    %14 = vector.shape_cast %13 : vector<1xf32> to vector<1x1x1xf32>
    %15 = vector.extract %14[0, 0, 0] : f32 from vector<1x1x1xf32>
    %16 = vector.broadcast %15 : f32 to vector<1x128xf32>
    %c0_5 = arith.constant 0 : index
    %c0_6 = arith.constant 0 : index
    %17 = vector.load %arg4[%c0_5, %c0_6] : memref<1x128xf32, #tpu.memory_space<vmem>>, vector<1x128xf32>
    tpu.vector_store %arg4[%c0_5, %c0_6], %16 {strides = array<i32>} : memref<1x128xf32, #tpu.memory_space<vmem>>, vector<1x128xf32>,
    return
  }
  func.func @transform_0(%arg0: i32, %arg1: i32) -> (i32, i32) {
    %c0_i32 = arith.constant 0 : i32
    return %arg0, %arg1 : i32, i32
  }
  func.func @transform_1(%arg0: i32, %arg1: i32) -> (i32, i32) {
    %c0_i32 = arith.constant 0 : i32
    %c0_i32_0 = arith.constant 0 : i32
    return %arg0, %c0_i32 : i32, i32
  }
  func.func @transform_2(%arg0: i32, %arg1: i32) -> (i32, i32) {
    %c0_i32 = arith.constant 0 : i32
    %c0_i32_0 = arith.constant 0 : i32
    return %arg0, %c0_i32 : i32, i32
  }
}

</mosaic_0001>

<bundles_post_ra>
// kernel: nll_loss.1
= control target key start
LH: loop header
LB: loop body
LE: loop exit
PB: predicated region body
PF: predicated region fallthrough
CT: control target
= control target key end

     0   :  { %7 = vsyncpa [#allocation3], 0  ;;  %s215_s0 = inlined_call_operand.hbm [shape: f32[8,16], index: 0, kind: input, shape index: {}]   ;;  %s216_s1 = inlined_call_operand.hbm [shape: s32[8,1], index: 1, kind: input, shape index: {}]   ;;  %s217_s2 = inlined_call_operand.hbm [shape: f32[1,128], index: 2, kind: output, shape index: {}]  }
   0x1   :  { %8 = vsyncpa [#allocation6], 0 }
   0x2   :  { %9 = vsyncpa [#allocation4], 0  ;;  %s160_s9 = smov [#allocation2]   ;;  %s161_s11 = smov [#allocation5]  }
   0x3   :  { %s16_s10 = sshll.u32 %s160_s9, 4  ;;  %s26_s12 = sshll.u32 %s161_s11, 4  ;;  %s17_s10 = int_to_ptr.vmem [resolvable:$true] %s16_s10  ;;  %s27_s12 = int_to_ptr.vmem [resolvable:$true] %s26_s12 }
   0x4   :  { %s88_s15 = scalar_lea.hbm %s215_s0, 128 }
   0x5   :  { %p89_p0 = scmp.ne.s32.totalorder %s215_s0, %s88_s15  ;;  %p92_p1 = scmp.lt.u32.totalorder %s88_s15, %s215_s0 }
   0x7   :  { %p94_p2 = pnand %p92_p1, %p89_p0 }
   0x9   :  { %97 = shalt.err (!%p94_p2)
}
   0xa   :  { %s98_s20 = scalar_lea.vmem %s17_s10, 128  ;;  %p103_p4 = scmp.lt.s32.totalorder %s17_s10, %s17_s10 }
   0xb   :  { %p99_p3 = scmp.ne.s32.totalorder %s17_s10, %s98_s20  ;;  %p104_p5 = scmp.lt.s32.totalorder %s98_s20, %s98_s20 }
   0xd   :  { %p105_p6 = por %p104_p5, %p103_p4 }
   0xf   :  { %p106_p7 = pnand %p105_p6, %p99_p3 }
  0x11   :  { %109 = shalt.err (!%p106_p7)
}
  0x12   :  { %19 = dma.hbm_to_vmem [thread:$0]  %s215_s0, 128, %s17_s10, [#allocation3]  }
  0x13   :  { %s110_s25 = scalar_lea.hbm %s216_s1, 128 }
  0x14   :  { %p111_p8 = scmp.ne.s32.totalorder %s216_s1, %s110_s25  ;;  %p114_p9 = scmp.lt.u32.totalorder %s110_s25, %s216_s1 }
  0x16   :  { %p116_p10 = pnand %p114_p9, %p111_p8 }
  0x18   :  { %119 = shalt.err (!%p116_p10)
}
  0x19   :  { %s120_s30 = scalar_lea.vmem %s27_s12, 128  ;;  %p125_p12 = scmp.lt.s32.totalorder %s27_s12, %s27_s12 }
  0x1a   :  { %p121_p11 = scmp.ne.s32.totalorder %s27_s12, %s120_s30  ;;  %p126_p13 = scmp.lt.s32.totalorder %s120_s30, %s120_s30 }
  0x1c   :  { %p127_p0 = por %p126_p13, %p125_p12 }
  0x1e   :  { %p128_p1 = pnand %p127_p0, %p121_p11 }
  0x20   :  { %131 = shalt.err (!%p128_p1)
}
  0x21   :  { %29 = dma.hbm_to_vmem [thread:$0]  %s216_s1, 128, %s27_s12, [#allocation6]  }
  0x22   :  { %154 = dma.done.wait [#allocation3], 128  }
  0x23   :  { %155 = vsyncadd [#allocation3], 4294967168 }
  0x24   :  { %156 = dma.done.wait [#allocation6], 128  }
  0x25   :  { %157 = vsyncadd [#allocation6], 4294967168  ;;  %v162_v0 = vmov 0   ;;  %v37_v1 = vld [vmem:[#allocation5] sm:$0xff]  ;;  %v41_v2 = vlaneseq  ;;  %v36_v4 = vld [vmem:[#allocation2] sm:$0xff]  ;;  %vm48_vm0 = vcmask 130048  }
  0x26   :  { %87 = vset.pattern.permute.xlu0 %v162_v0  ;;  %vm52_vm2 = vcmask 7168   ;;  %s163_s1 = smov [#allocation7]  }
  0x27   :  { %44 = vperm.xlu0 %87, %v37_v1   ;;  %v42_v3 = vand.u32 127, %v41_v2  ;;  %s71_s4 = sshll.u32 %s163_s1, 4  ;;  %s72_s4 = int_to_ptr.vmem [resolvable:$true] %s71_s4 }
  0x28   :  { %s132_s6 = scalar_lea.vmem %s72_s4, 16  ;;  %s136_s7 = scalar_lea.vmem %s72_s4, 32 }
  0x29   :  { %p133_p2 = scmp.ne.s32.totalorder %s72_s4, %s132_s6  ;;  %p137_p3 = scmp.lt.s32.totalorder %s72_s4, %s72_s4 }
  0x2a   :  { %p138_p4 = scmp.lt.s32.totalorder %s136_s7, %s132_s6 }
  0x2c   :  { %p139_p5 = por %p138_p4, %p137_p3 }
  0x2e   :  { %p140_p6 = pnand %p139_p5, %p133_p2 }
  0xa6   :  { %v45_v5 = vpop.permute.xlu0 %44 }
  0xa7   :  { %vm46_vm1 = vcmp.eq.s32.totalorder %v42_v3, %v45_v5 }
  0xa8   :  { %v47_v6 = vsel %vm46_vm1, %v36_v4, 0.0 }
  0xa9   :  { %v49_v7 = vsel %vm48_vm0, %v47_v6, 0.0 }
  0xaa   :  { %50 = vadd.xlane.f32.xlu0 %v49_v7 }
 0x137   :  { %v51_v8 = vpop.xlane.xlu0 %50 }
 0x138   :  { %v53_v9 = vsel %vm52_vm2, %v51_v8, 0.0 }
 0x139   :  { %54 = vadd.xlane.f32.xlu1 %v53_v9 }
 0x1c6   :  { %v55_v10 = vpop.xlane.xlu1 %54 }
 0x1c7   :  { %v56_v11 = vrot.slane %v55_v10, 4 }
 0x1c9   :  { %v57_v12 = vadd.f32 %v56_v11, %v55_v10 }
 0x1cb   :  { %v58_v13 = vrot.slane %v57_v12, 2 }
 0x1cd   :  { %v59_v14 = vadd.f32 %v58_v13, %v57_v12 }
 0x1cf   :  { %v60_v15 = vrot.slane %v59_v14, 1 }
 0x1d1   :  { %v61_v16 = vadd.f32 %v60_v15, %v59_v14 }
 0x1d3   :  { %81 = vpush %v61_v16 }
 0x204   :  { %s82_s5 = spop %81 }
 0x205   :  { %v63_v17 = vstv %s82_s5 }
 0x206   :  { %64 = vst [vmem:[#allocation7] sm:$0x1] %v63_v17 }
 0x207   :  { %143 = shalt.err (!%p140_p6)
}
 0x208   :  { %s144_s10 = scalar_lea.hbm %s217_s2, 16 }
 0x209   :  { %p145_p7 = scmp.ne.s32.totalorder %s217_s2, %s144_s10  ;;  %p148_p8 = scmp.lt.u32.totalorder %s144_s10, %s217_s2 }
 0x20b   :  { %p150_p9 = pnand %p148_p8, %p145_p7 }
 0x20d   :  { %153 = shalt.err (!%p150_p9)
}
 0x20e   :  { %74 = dma.vmem_to_hbm [thread:$0]  %s72_s4, 16, %s217_s2, [#allocation4]  }
 0x20f   :  { %158 = dma.done.wait [#allocation4], 16  }
 0x210   :  { %159 = vsyncadd [#allocation4], 4294967280 }
 0x211   :  { %78 = vsyncpa [#allocation3], 1 }
 0x212   :  { %79 = vsyncpa [#allocation6], 1 }
 0x213   :  { %80 = vsyncpa [#allocation4], 1 }

</bundles_post_ra>
